<compile_context>
chip_gen: v5e
topology: v5e:2x2
jax: 0.10.0
libtpu: 0.0.40
codegen_flags: <defaults>
</compile_context>

<pallas_src>
from functools import partial

import numpy as np
import jax
import jax.numpy as jnp
from jax.experimental import pallas as pl
from jax.experimental.pallas import tpu as pltpu


# ------------------------------ hardware probing ---------------------------- #

_HW_CACHE = {}


def _vmem_limit_bytes() -> int:
    """Explicit scoped-VMEM limit: ~45% of physical VMEM, floored at 32 MiB, capped at 96 MiB."""
    if "vmem_limit" not in _HW_CACHE:
        phys = None
        try:
            info = pltpu.get_tpu_info()
            phys = getattr(info, "vmem_capacity_bytes", None)
        except Exception:
            phys = None
        if not phys:
            phys = 64 * 1024 * 1024  # conservative fallback: v7x per-TC VMEM
        limit = int(phys * 0.45)
        _HW_CACHE["vmem_limit"] = max(32 * 1024 * 1024, min(limit, 96 * 1024 * 1024))
    return _HW_CACHE["vmem_limit"]


def _block_budget_bytes() -> int:
    """Per-block byte budget: in + out, each double-buffered (4x blk), must fit the VMEM limit."""
    return min(8 * 1024 * 1024, _vmem_limit_bytes() // 5)


def _num_tensorcores() -> int:
    """Best-effort TensorCore count (2 on v7x-style chips, 1 on v5e/v6e)."""
    if "cores" not in _HW_CACHE:
        cores = 1
        try:
            info = pltpu.get_tpu_info()
            for name in ("num_cores", "core_count", "tensorcore_count", "num_tensorcores"):
                v = getattr(info, name, None)
                if v:
                    cores = int(v)
                    break
        except Exception:
            pass
        if cores == 1:
            try:
                v = getattr(jax.devices()[0], "num_cores", None)
                if v:
                    cores = int(v)
            except Exception:
                pass
        _HW_CACHE["cores"] = cores
    return _HW_CACHE["cores"]


# ------------------------------ small helpers ------------------------------ #

def _seq_tile_rows(dtype) -> int:
    """Native sublane tile (second-minor) for this dtype: 8 (4-byte), 16 (2-byte), 32 (1-byte)."""
    return {4: 8, 2: 16, 1: 32}.get(jnp.dtype(dtype).itemsize, 8)


def _largest_divisor_leq(n: int, cap: int) -> int:
    cap = max(1, min(n, cap))
    for d in range(cap, 0, -1):
        if n % d == 0:
            return d
    return 1


def _head_tile(H: int, per_head_bytes: int, budget_bytes: int) -> int:
    """Heads per grid step: as many as fit the per-block budget."""
    cap = max(1, budget_bytes // max(per_head_bytes, 1))
    return _largest_divisor_leq(H, cap)


def _seq_tile(S_in: int, sub: int, D: int, itemsize: int, budget_bytes: int) -> int:
    """Rows of the prefix written per grid step (multiple of the sublane tile, need not divide S_in)."""
    if S_in % sub != 0:  # only reachable when S_in == S_max (full-dim block exemption) -> no tiling
        return S_in
    budget_rows = max(sub, (budget_bytes // max(D * itemsize, 1)) // sub * sub)
    return min(S_in, budget_rows)


# ----------------------------- Pallas kernels ------------------------------ #

def _prefill_kernel(cur_ref, cache_hbm_ref, out_ref):
    # cache_hbm_ref (memory_space=pl.ANY) exists only so the cache HBM buffer can be aliased to
    # the output; it is never read. out_ref covers exactly the rows being overwritten.
    del cache_hbm_ref
    # TODO(synk): plain round-to-nearest cast; not a scaled quantization for int8/fp8 caches.
    out_ref[...] = cur_ref[...].astype(out_ref.dtype)


def _decode_kernel(s_max, sub, idx_ref, cur_ref, win_ref, out_ref):
    # win_ref/out_ref: the (B, H, sub, D) cache window containing position idx-1 (aliased buffers).
    # Carry the existing rows so the block writes back losslessly, then overwrite one row.
    out_ref[...] = win_ref[...]
    pos = idx_ref[0] - 1

    # Out-of-range idx: the row write is skipped, but the clamped window is still read and written
    # back unchanged (harmless wasted DMA). Do NOT remove the guard -- it protects VMEM/cache rows.
    @pl.when(jnp.logical_and(pos >= 0, pos < s_max))
    def _():
        row = pos % sub
        out_ref[:, :, pl.ds(row, cur_ref.shape[2]), :] = cur_ref[...].astype(out_ref.dtype)


# ----------------------------- pallas wrappers ------------------------------ #

@partial(jax.jit, donate_argnums=(0,))
def _prefill_pallas(cache, cur):
    """cache[:, :, :S_in, :] = cur, in place (cache buffer donated + aliased)."""
    B, H, S_max, D = cache.shape
    S_in = cur.shape[2]
    itemsize = jnp.dtype(cache.dtype).itemsize
    sub = _seq_tile_rows(cache.dtype)
    budget = _block_budget_bytes()

    TS = _seq_tile(S_in, sub, D, itemsize, budget)   # rows per step (long-context friendly)
    n_full = S_in // TS
    rem = S_in - n_full * TS                         # sublane-aligned remainder (< TS)

    TH = _head_tile(H, TS * D * itemsize, budget)    # heads per step (amortize step overhead)
    # Only split heads further when the whole grid would otherwise be a single step AND there are
    # two TensorCores to feed (v7x-style megacore); otherwise extra steps are pure overhead.
    if B * (H // TH) * n_full == 1 and H > 1 and _num_tensorcores() >= 2:
        TH = _largest_divisor_leq(H, max(1, H // 2))

    grid = (B, H // TH, n_full)
    blk = (None, TH, TS, D)
    idx_map = lambda b, hb, s: (b, hb, s, 0)

    out = pl.pallas_call(
        _prefill_kernel,
        out_shape=jax.ShapeDtypeStruct(cache.shape, cache.dtype),
        grid_spec=pltpu.PrefetchScalarGridSpec(
            num_scalar_prefetch=0,
            grid=grid,
            in_specs=[
                pl.BlockSpec(blk, idx_map),            # cur: the only data actually read
                pl.BlockSpec(memory_space=pl.ANY),     # cache: aliased to output, never read
            ],
            out_specs=pl.BlockSpec(blk, idx_map),
        ),
        compiler_params=pltpu.CompilerParams(
            dimension_semantics=("parallel",) * len(grid),
            vmem_limit_bytes=_vmem_limit_bytes()),
        input_output_aliases={1: 0},                   # cache buffer <-> output buffer (in place)
        cost_estimate=pl.CostEstimate(
            flops=0, transcendentals=0,
            bytes_accessed=int(2 * B * H * n_full * TS * D * itemsize)),
    )(cur, cache)

    if rem:
        # Small sublane-aligned tail that TS did not cover; XLA performs this in place on the
        # donated/aliased buffer. Keeps the kernel at large, roofline-friendly blocks.
        off = n_full * TS
        tail = jax.lax.slice_in_dim(cur, off, S_in, axis=2).astype(cache.dtype)
        out = jax.lax.dynamic_update_slice(out, tail, (0, 0, off, 0))
    return out


@partial(jax.jit, donate_argnums=(0,))
def _decode_pallas(cache, cur, idx):
    """cache[:, :, idx-1, :] = cur (single new token), in place (cache buffer donated + aliased).

    Single grid step: the whole (B, H, sub, D) working set is a few hundred KiB at most, so
    splitting it across grid steps (or TensorCores) only adds per-step overhead.
    """
    B, H, S_max, D = cache.shape
    S_cur = cur.shape[2]                               # == 1 on this path
    itemsize = jnp.dtype(cache.dtype).itemsize
    sub = _seq_tile_rows(cache.dtype)

    def win_map(i, idx_ref):                           # sequence tile containing the write position
        p = jnp.minimum(jnp.maximum(idx_ref[0] - 1, 0), S_max - 1)
        return (0, 0, p // sub, 0)

    def cur_map(i, idx_ref):
        return (0, 0, 0, 0)

    idx_arr = jnp.asarray(idx, jnp.int32).reshape(-1)[:1]

    # TODO(synk): optional further win -- write the token row with a direct strided
    # pltpu.make_async_copy into the pl.ANY-aliased cache instead of this sublane-tile RMW.
    return pl.pallas_call(
        partial(_decode_kernel, S_max, sub),
        out_shape=jax.ShapeDtypeStruct(cache.shape, cache.dtype),
        grid_spec=pltpu.PrefetchScalarGridSpec(
            num_scalar_prefetch=1,
            grid=(1,),
            in_specs=[
                pl.BlockSpec((B, H, S_cur, D), cur_map),   # new token(s)
                pl.BlockSpec((B, H, sub, D), win_map),     # cache window (read-modify-write)
            ],
            out_specs=pl.BlockSpec((B, H, sub, D), win_map),
        ),
        compiler_params=pltpu.CompilerParams(
            dimension_semantics=("arbitrary",)),
        input_output_aliases={2: 0},                   # (idx, cur, cache) -> cache aliases output 0
        cost_estimate=pl.CostEstimate(
            flops=0, transcendentals=0,
            bytes_accessed=int((S_cur + 2 * sub) * B * H * D * itemsize)),
    )(idx_arr, cur, cache)


# ------------------------------ JAX fallbacks ------------------------------- #

def _jnp_prefill(cache, cur):
    # TODO(synk): fallback for prefixes that are not sublane-aligned / non-4D layouts (plain JAX).
    return jax.lax.dynamic_update_slice(cache, cur.astype(cache.dtype), (0,) * cache.ndim)


def _jnp_index_copy(cache, cur, idx, dim):
    # Generic torch.Tensor.index_copy_ equivalent (handles multi-element idx), plain JAX scatter.
    d = dim % cache.ndim
    idx_arr = jnp.asarray(idx, jnp.int32).reshape(-1) - 1
    ix = (slice(None),) * d + (idx_arr,)
    return cache.at[ix].set(cur.astype(cache.dtype))


def _pallas_prefill_ok(cache, cur, dim):
    if dim not in (2, -2) or cache.ndim != 4 or cur.ndim != 4:
        return False
    if jnp.dtype(cache.dtype).itemsize not in (1, 2, 4):
        return False
    S_in, S_max = cur.shape[2], cache.shape[2]
    return S_in == S_max or S_in % _seq_tile_rows(cache.dtype) == 0


def _pallas_decode_ok(cache, cur, dim, idx):
    if dim not in (2, -2) or cache.ndim != 4 or cur.ndim != 4 or cur.shape[2] != 1:
        return False
    itemsize = jnp.dtype(cache.dtype).itemsize
    if itemsize not in (1, 2, 4):
        return False
    if jnp.asarray(idx).size != 1:        # multi-element index_copy_ -> JAX scatter fallback
        return False
    B, H, _, D = cache.shape
    sub = _seq_tile_rows(cache.dtype)
    win_bytes = B * H * sub * D * itemsize
    return 3 * win_bytes <= _vmem_limit_bytes()


# ------------------------------- KVCache class ------------------------------ #

class KVCache:
    """JAX/Pallas port of the optimum-habana Exaone KVCache.

    JAX arrays are immutable, so `update` returns (new_cache, returned_value). The Pallas
    paths donate + alias the cache buffer, so the update happens in place in HBM and only
    the written window generates memory traffic.
    """

    def __init__(self):
        self.cache = None
        self.inp_seq_len = -1

    def allocate(self, inp_seq_len, dtype, device=None, shape=None):
        del device  # placement is handled by JAX's default device / sharding
        if self.cache is None or self.cache.shape != shape:
            self.inp_seq_len = inp_seq_len
            self.cache = jnp.zeros(shape, dtype=dtype)
        else:
            assert self.inp_seq_len == inp_seq_len, (
                f"inp_seq_len must be the same. self.inp_seq_len:{self.inp_seq_len} "
                f"inp_seq_len:{inp_seq_len}")
            self.cache = jnp.zeros_like(self.cache)

    @staticmethod
    def update(prev, cur, dim, idx, inp_seq_len):
        """Returns (new_prev, returned_value), mirroring the in-place torch semantics."""
        orig_cur = cur
        if prev.shape == cur.shape:
            # Zero-copy fast path: rebinding the cache to `cur` is identical to prev.copy_(cur)
            # since JAX arrays are immutable. No kernel, no HBM traffic.
            new_prev = cur if cur.dtype == prev.dtype else cur.astype(prev.dtype)
            return new_prev, orig_cur
        if idx is not None and cur.shape[2] > 1 and cur.shape[2] <= prev.shape[2]:
            if inp_seq_len is not None and inp_seq_len > 0:
                assert inp_seq_len == cur.shape[2], (
                    f"prefill writes cur.shape[2]={cur.shape[2]} rows but inp_seq_len={inp_seq_len}")
            new_prev = (_prefill_pallas(prev, cur) if _pallas_prefill_ok(prev, cur, dim)
                        else _jnp_prefill(prev, cur))
            return new_prev, orig_cur
        if idx is not None:
            new_prev = (_decode_pallas(prev, cur, idx) if _pallas_decode_ok(prev, cur, dim, idx)
                        else _jnp_index_copy(prev, cur, idx, dim))
            return new_prev, new_prev
        # TODO(synk): torch.cat growth path has a dynamic output shape; left as plain JAX glue.
        cat = jnp.concatenate((prev, cur), axis=dim)
        return cat, cat

    def get_shape(self):
        return None if self.cache is None else self.cache.shape

    def forward(self, cur, dim, idx):
        new_cache, out = self.update(self.cache, cur, dim, idx, self.inp_seq_len)
        self.cache = new_cache
        return out

    __call__ = forward


# ----------------------------------- main ----------------------------------- #

if __name__ == "__main__":
    B, H, S_MAX, D = 2, 4, 16, 128
    S_IN = 8
    dtype = jnp.float32

    key = jax.random.PRNGKey(0)
    k1, k2, k3 = jax.random.split(key, 3)
    cur_prefill = jax.random.normal(k1, (B, H, S_IN, D), dtype=dtype)
    cur_decode = jax.random.normal(k2, (B, H, 1, D), dtype=dtype)
    cur_full = jax.random.normal(k3, (B, H, S_MAX, D), dtype=dtype)

    kv = KVCache()
    kv.allocate(inp_seq_len=S_IN, dtype=dtype, shape=(B, H, S_MAX, D))

    # --- prefill step: idx given, 1 < cur_S <= cache_S -> write prefix rows, return cur
    token_idx = jnp.array([S_IN], dtype=jnp.int32)
    out_prefill = kv(cur_prefill, dim=2, idx=token_idx)

    # --- decode step: idx given, single new token -> write position idx-1, return cache
    token_idx = jnp.array([S_IN + 1], dtype=jnp.int32)   # writes position S_IN
    out_decode = kv(cur_decode, dim=2, idx=token_idx)

    out_prefill, out_decode, cache = jax.block_until_ready(
        (out_prefill, out_decode, kv.cache))

    # Reference (pure JAX) check for prefill + decode
    ref = jnp.zeros((B, H, S_MAX, D), dtype=dtype)
    ref = ref.at[:, :, :S_IN, :].set(cur_prefill)
    ref = ref.at[:, :, S_IN:S_IN + 1, :].set(cur_decode)

    assert out_prefill.shape == cur_prefill.shape
    assert np.allclose(np.asarray(out_prefill), np.asarray(cur_prefill))
    assert out_decode.shape == (B, H, S_MAX, D)
    assert np.allclose(np.asarray(cache), np.asarray(ref), atol=0, rtol=0)
    assert np.allclose(np.asarray(out_decode), np.asarray(ref), atol=0, rtol=0)

    # --- full-overwrite step: prev.shape == cur.shape -> cache <- cur, return cur (zero-copy path)
    out_full = kv(cur_full, dim=2, idx=None)
    out_full, cache_full = jax.block_until_ready((out_full, kv.cache))
    assert np.allclose(np.asarray(cache_full), np.asarray(cur_full), atol=0, rtol=0)
    assert np.allclose(np.asarray(out_full), np.asarray(cur_full), atol=0, rtol=0)

    print("KERNEL_OK")
</pallas_src>

<mosaic_0001>
module attributes {stable_mosaic.version = 11 : i64} {
  func.func @_prefill_kernel(%arg0: i32, %arg1: i32, %arg2: i32, %arg3: memref<1x4x8x128xf32, #tpu.memory_space<vmem>>, %arg4: memref<2x4x16x128xf32, #tpu.memory_space<any>>, %arg5: memref<1x4x8x128xf32, #tpu.memory_space<vmem>>) attributes {dimension_semantics = [#tpu.dimension_semantics<parallel>, #tpu.dimension_semantics<parallel>, #tpu.dimension_semantics<parallel>], iteration_bounds = array<i64: 2, 1, 1>, scalar_prefetch = 0 : i64, scratch_operands = 0 : i64, tpu.core_type = #tpu.core_type<tc>, window_params = [{transform_indices = @transform_0, window_bounds = array<i64: 1, 4, 8, 128>}, {}, {transform_indices = @transform_2, window_bounds = array<i64: 1, 4, 8, 128>}]} {
    %c0 = arith.constant 0 : index
    %c0_0 = arith.constant 0 : index
    %c0_1 = arith.constant 0 : index
    %c0_2 = arith.constant 0 : index
    %0 = vector.load %arg3[%c0, %c0_0, %c0_1, %c0_2] : memref<1x4x8x128xf32, #tpu.memory_space<vmem>>, vector<1x4x8x128xf32>
    %1 = vector.shape_cast %0 : vector<1x4x8x128xf32> to vector<4x8x128xf32>
    %c0_3 = arith.constant 0 : index
    %c0_4 = arith.constant 0 : index
    %c0_5 = arith.constant 0 : index
    %c0_6 = arith.constant 0 : index
    %2 = vector.load %arg5[%c0_3, %c0_4, %c0_5, %c0_6] : memref<1x4x8x128xf32, #tpu.memory_space<vmem>>, vector<1x4x8x128xf32>
    %3 = vector.shape_cast %2 : vector<1x4x8x128xf32> to vector<4x8x128xf32>
    %4 = vector.shape_cast %1 : vector<4x8x128xf32> to vector<1x4x8x128xf32>
    tpu.vector_store %arg5[%c0_3, %c0_4, %c0_5, %c0_6], %4 {strides = array<i32>} : memref<1x4x8x128xf32, #tpu.memory_space<vmem>>, vector<1x4x8x128xf32>,
    return
  }
  func.func @transform_0(%arg0: i32, %arg1: i32, %arg2: i32) -> (i32, i32, i32, i32) {
    %c0_i32 = arith.constant 0 : i32
    %c0_i32_0 = arith.constant 0 : i32
    return %arg0, %arg1, %arg2, %c0_i32 : i32, i32, i32, i32
  }
  func.func @transform_2(%arg0: i32, %arg1: i32, %arg2: i32) -> (i32, i32, i32, i32) {
    %c0_i32 = arith.constant 0 : i32
    %c0_i32_0 = arith.constant 0 : i32
    return %arg0, %arg1, %arg2, %c0_i32 : i32, i32, i32, i32
  }
}

</mosaic_0001>

<bundles_post_ra>
// kernel: _prefill_pallas.1
= control target key start
LH: loop header
LB: loop body
LE: loop exit
PB: predicated region body
PF: predicated region fallthrough
CT: control target
= control target key end

     0   :  { %7 = vsyncpa [#allocation3], 0  ;;  %s631_s0 = inlined_call_operand.hbm [shape: f32[2,4,8,128], index: 0, kind: input, shape index: {}]   ;;  %s632_s1 = inlined_call_operand.hbm [shape: f32[2,4,16,128], index: 1, kind: input, shape index: {}, may-alias: {1,2}]   ;;  %s633_s2 = inlined_call_operand.hbm [shape: f32[2,4,16,128], index: 2, kind: output, shape index: {}, may-alias: {1,2}]  }
   0x1   :  { %9 = vsyncpa [#allocation3 + $0x1], 0 }
   0x2   :  { %10 = vsyncpa [#allocation4], 0 }
   0x3   :  { %12 = vsyncpa [#allocation4 + $0x1], 0  ;;  %s508_s9 = smov 0   ;;  %s510_s10 = smov 0  }
   0x4   :  { %s512_s11 = smov 0   ;;  %s514_s12 = smov 0  }
   0x5   :  { %s516_s13 = smov 0   ;;  %s518_s14 = smov 0  }
   0x6 LB: > { %s290_s1 = sadd.s32 4294967295, %s486_s14   ;;  %s291_s15 = sadd.s32 4294967294, %s486_s14   ;;  %s486_s14 = sphi %s518_s14, %s18_s14   ;;  %s482_s13 = sphi %s516_s13, %s642_s13   ;;  %s478_s12 = sphi %s514_s12, %s641_s12   ;;  %s474_s11 = sphi %s512_s11, %s640_s11   ;;  %s470_s10 = sphi %s510_s10, %s639_s10   ;;  %s466_s9 = sphi %s508_s9, %s638_s9  }
   0x7   : > { %s37_s16 = sadd.s32 1, %s482_s13  ;;  %s48_s17 = sadd.s32 1, %s474_s11 }
   0x8   : > { %p39_p0 = scmp.ge.s32.totalorder %s37_s16, 2  ;;  %p55_p1 = scmp.ne.s32.totalorder %s474_s11, %s470_s10 }
   0x9   : > { %p56_p2 = scmp.eq.s32.totalorder %s486_s14, 0  ;;  %p61_p3 = scmp.ne.s32.totalorder %s470_s10, %s466_s9 }
   0xa   : > { %s644_s16 = smov (%p39_p0, %s37_s16), 0  ;;  %p62_p5 = scmp.eq.s32.totalorder %s290_s1, 0 }
   0xb   : > { %p549_p4 = por %p56_p2, %p55_p1  ;;  %s41_s19 = ssub.s32 %s482_s13, %s644_s16 }
   0xc   : > { %p89_p6 = scmp.eq.s32.totalorder %s290_s1, 1  ;;  %p46_p7 = scmp.eq.s32.totalorder %s41_s19, 0 }
   0xd   : > { %p555_p8 = por %p62_p5, %p61_p3  ;;  %p95_p10 = scmp.eq.s32.totalorder %s291_s15, 1 }
   0xe   : > { %p559_p9 = por %p89_p6, %p55_p1  ;;  %p293_p12 = scmp.ge.s32.totalorder %s486_s14, 2 }
   0xf   : > { %s564_s22 = scalar_select %p46_p7, %s474_s11, %s48_s17  }
  0x10   : > { %p566_p11 = por %p95_p10, %p61_p3  ;;  %p319_p13 = scmp.lt.s32.totalorder %s486_s14, 2 }
  0x11   : > { %s115_s24 = sand.u32 1, %s474_s11   ;;  %s305_s26 = sshll.u32 %s482_s13, 5 }
  0x12   : > { %s294_s25 = sshll.u32 %s115_s24, 5  ;;  %s127_s29 = scalar_lea.hbm %s631_s0, %s305_s26 }
  0x13   : > { %s119_s30 = scalar_lea.vmem [#allocation2], %s294_s25  ;;  %s128_s4 = sshll.u32 %s127_s29, 4  ;;  %s129_s4 = int_to_ptr.hbm [resolvable:$true] %s128_s4 }
  0x14   : > { %s130_s3 = sshll.u32 %s119_s30, 4  ;;  %p312_p0 = pnand %p319_p13, %p549_p4  ;;  %s131_s3 = int_to_ptr.vmem [resolvable:$true] %s130_s3 }
  0x15   : > { %p297_p1 = scmp.ge.s32.totalorder %s486_s14, 1  ;;  %s116_s5 = scalar_lea.sflag [#allocation3], %s115_s24 }
  0x16   : > { %s488_s6 = smov 128   ;;  %s489_s7 = smov 8  }
  0x17   : > { %314 = dma.hbm_to_vmem [thread:$0]  (!%p312_p0), %s129_s4, 512, %s131_s3, %s116_s5, %s488_s6, %s488_s6, %s489_s7  }
  0x18   : > { %p138_p2 = scmp.lt.s32.totalorder %s486_s14, 3 }
  0x1a   : > { %p139_p3 = pnand %p297_p1, %p138_p2 }
  0x1b   : > { %s582_s8 = sand.u32 (!%p139_p3), 1, %s470_s10  }
  0x1c   : > { %142 = sbr.rel (%p139_p3) target bundleno = 51 (0x33), region = 24  ;;  %s298_s1 = sshll.u32 (!%p139_p3), %s582_s8, 5 }
  0x1d   : > { %s145_s15 = scalar_lea.sflag (!%p139_p3), [#allocation3], %s582_s8  ;;  %s148_s17 = scalar_lea.vmem (!%p139_p3), [#allocation2], %s298_s1 }
  0x21   : > { %457 = dma.done.wait (%p555_p8), %s145_s15, 512  }
  0x22   : > { %459 = vsyncadd (%p555_p8), %s145_s15, 4294966784  ;;  %s306_s18 = sshll.u32 %s478_s12, 6  ;;  %s167_s26 = scalar_lea.vmem [#allocation5], %s298_s1  ;;  %v170_v0 = vld [vmem:[%s148_s17] sm:$0xff]  ;;  %v171_v1 = vld [vmem:[%s148_s17 + $0x8] sm:$0xff] }
  0x23   : > { %s194_s25 = scalar_lea.hbm %s633_s2, %s306_s18  ;;  %s195_s27 = sshll.u32 %s167_s26, 4  ;;  %v172_v2 = vld [vmem:[%s148_s17 + $0x10] sm:$0xff]  ;;  %174 = vst [vmem:[%s167_s26] sm:$0xff] %v170_v0  ;;  %v173_v3 = vld [vmem:[%s148_s17 + $0x18] sm:$0xff]  ;;  %s594_s27 = int_to_ptr.vmem [resolvable:$true] %s195_s27 }
  0x24   : > { %s197_s28 = sshll.u32 %s194_s25, 4  ;;  %175 = vst [vmem:[%s167_s26 + $0x8] sm:$0xff] %v171_v1  ;;  %s179_s12 = scalar_lea.sflag [#allocation4], %s582_s8  ;;  %s198_s28 = int_to_ptr.hbm [resolvable:$true] %s197_s28 }
  0x25   : > { %176 = vst [vmem:[%s167_s26 + $0x10] sm:$0xff] %v172_v2  ;;  %s418_s20 = sshra.s32 %s198_s28, 4  ;;  %s424_s4 = scalar_lea.hbm %s633_s2, 128  ;;  %s419_s20 = int_to_ptr.hbm [resolvable:$true] %s418_s20 }
  0x26   : > { %177 = vst [vmem:[%s167_s26 + $0x18] sm:$0xff] %v173_v3  ;;  %s420_s29 = scalar_lea.hbm %s419_s20, 32  ;;  %p425_p7 = scmp.lt.s32.totalorder %s419_s20, %s633_s2 }
  0x27   : > { %p421_p4 = scmp.ne.s32.totalorder %s419_s20, %s420_s29  ;;  %p426_p8 = scmp.lt.s32.totalorder %s424_s4, %s420_s29 }
  0x29   : > { %p422_p5 = pnand %p421_p4, %p559_p9  ;;  %p427_p10 = por %p426_p8, %p425_p7 }
  0x2b   : > { %p423_p6 = pneg %p422_p5 }
  0x2d   : > { %p428_p13 = pnand %p427_p10, %p423_p6 }
  0x2f   : > { %431 = shalt.err (!%p428_p13)
}
  0x30   : > { %s490_s7 = smov 128   ;;  %s491_s8 = smov 256  }
  0x31   : > { %s492_s1 = smov 8  }
  0x32   : > { %309 = dma.vmem_to_hbm [thread:$0]  (%p559_p9), %s594_s27, 512, %s198_s28, %s179_s12, %s490_s7, %s491_s8, %s492_s1  }
  0x33 PF: > { %s212_s15 = sand.u32 1, %s466_s9   ;;  %p316_p0 = pnand %p293_p12, %p566_p11 }
  0x34   : > { %s213_s17 = scalar_lea.sflag [#allocation4], %s212_s15 }
  0x35   : > { %p317_p1 = pneg %p316_p0 }
  0x37   : > { %461 = dma.done.wait (%p317_p1), %s213_s17, 512  }
  0x38   : > { %463 = vsyncadd (%p317_p1), %s213_s17, 4294966784  ;;  %s18_s14 = sadd.s32 1, %s486_s14   ;;  %s638_s9 = smov %s470_s10 }
  0x39   : > { %p15_p2 = scmp.ge.s32.totalorder %s18_s14, 4   ;;  %s639_s10 = smov %s474_s11 }
  0x3a   : > { %s640_s11 = smov %s564_s22  ;;  %s641_s12 = smov %s482_s13 }
  0x3b   : > { %s642_s13 = smov %s644_s16  ;;  %17 = sbr.rel (!%p15_p2) target bundleno = 6 (0x6), region = 69 }
  0x40   :  { %219 = vsyncpa [#allocation3], 1 }
  0x41   :  { %221 = vsyncpa [#allocation3 + $0x1], 1 }
  0x42   :  { %222 = vsyncpa [#allocation4], 1 }
  0x43   :  { %224 = vsyncpa [#allocation4 + $0x1], 1 }

</bundles_post_ra>
